<compile_context>
chip_gen: v5e
topology: v5e:2x2
jax: 0.10.0
libtpu: 0.0.40
codegen_flags: <defaults>
</compile_context>

<pallas_src>
import jax
import jax.numpy as jnp
from jax.experimental import pallas as pl
from jax.experimental.pallas import tpu as pltpu

# ------------------------------ static config -------------------------------
DIM_STATE, DIM_LATENT = 16, 8
D_SE, D_LE = 32, 16              # policy_state/latent_embedding_dim
H1, H2 = 32, 32                  # hidden_layers
D_IN = D_SE + D_LE               # 48 (encoder output / MLP input width)
LANES = 128                      # lane-padded feature width
B = 8                            # demo batch size

# compact packed-parameter slab row offsets (all sublane-aligned, mult. of 8)
R_WSE = 0                        # [16,128] folded state-encoder weight (cols 0:32)
R_WLE = R_WSE + DIM_STATE        # [ 8,128] folded latent-encoder weight (cols 32:48)
R_W1 = R_WLE + DIM_LATENT        # [48,128] actor|critic layer-1 weights (cols 0:64)
R_W2 = R_W1 + D_IN               # [64,128] block-diag actor/critic layer-2
R_VECS = R_W2 + 2 * H1           # [ 8,128] bias rows + value-head row + value bias
N_ROWS = R_VECS + 8              # 144 rows total (72 KiB f32)


# ----------------------------- Pallas kernel --------------------------------
def policy_forward_kernel(s_ref, l_ref, p_ref, out_ref):
    f32 = jnp.float32
    state = s_ref[...]                               # [TB, 16]
    latent = l_ref[...]                              # [TB,  8]

    vecs = p_ref[R_VECS:R_VECS + 8, :]               # one aligned (8,128) load
    b_enc = vecs[0:1, :]
    b1 = vecs[1:2, :]
    b2 = vecs[2:3, :]
    vhead = vecs[3:4, :]                             # w_cl placed at lanes 32:64
    bcl = vecs[4:5, :]                               # b_cl replicated on all lanes

    # fused encoders (RMS norm folded offline).  Two compact dots with disjoint
    # output columns (state -> lanes 0:32, latent -> 32:48) == concat encoder.
    enc = jnp.tanh(
        jnp.dot(state, p_ref[R_WSE:R_WSE + DIM_STATE, :],
                preferred_element_type=f32)
        + jnp.dot(latent, p_ref[R_WLE:R_WLE + DIM_LATENT, :],
                  preferred_element_type=f32)
        + b_enc)

    # fused actor/critic layer 1 (K=48; lanes 0:32 actor, 32:64 critic)
    h1 = jnp.tanh(
        jnp.dot(enc[:, :D_IN], p_ref[R_W1:R_W1 + D_IN, :],
                preferred_element_type=f32) + b1)

    # fused actor/critic layer 2 (K=64, block diagonal)
    h2 = jnp.tanh(
        jnp.dot(h1[:, :2 * H1], p_ref[R_W2:R_W2 + 2 * H1, :],
                preferred_element_type=f32) + b2)

    # critic_linear head as VPU multiply + lane reduce (no N=1 MXU matmul)
    v = jnp.sum(h2 * vhead, axis=-1, keepdims=True)          # [TB, 1]

    # single lane-dense output: lanes 0:64 = [h_actor | h_critic],
    # lanes 64:128 = value (broadcast).  One unmasked full store.
    lane = jax.lax.broadcasted_iota(jnp.int32, h2.shape, 1)
    out_ref[...] = jnp.where(lane < 2 * H2, h2, v + bcl)


def _block_rows(b):
    """Batch-block size: multiple of 8, capped at 256 rows per grid step."""
    return max(8, min(256, ((b + 7) // 8) * 8))


def _policy_forward(state, latent, slab):
    b = state.shape[0]
    tb = _block_rows(b)
    nb = pl.cdiv(b, tb)
    bp = nb * tb
    if bp != b:
        state = jnp.pad(state, ((0, bp - b), (0, 0)))
        latent = jnp.pad(latent, ((0, bp - b), (0, 0)))

    out = pl.pallas_call(
        policy_forward_kernel,
        out_shape=jax.ShapeDtypeStruct((bp, LANES), jnp.float32),
        grid_spec=pltpu.PrefetchScalarGridSpec(
            num_scalar_prefetch=0,
            grid=(nb,),
            in_specs=[
                # full-lane-width input blocks (last dim == full array dim)
                pl.BlockSpec((tb, DIM_STATE), lambda i: (i, 0)),
                pl.BlockSpec((tb, DIM_LATENT), lambda i: (i, 0)),
                # constant block index -> slab DMA'd once, VMEM-resident
                pl.BlockSpec((N_ROWS, LANES), lambda i: (0, 0)),
            ],
            out_specs=pl.BlockSpec((tb, LANES), lambda i: (i, 0)),
        ),
        compiler_params=pltpu.CompilerParams(
            dimension_semantics=("parallel",)),
    )(state, latent, slab)

    value = out[:b, 2 * H2:2 * H2 + 1]
    hidden_actor = out[:b, :H2]
    return value, hidden_actor


policy_forward = jax.jit(_policy_forward)


# ----------------------- deterministic parameter init -----------------------
def init_normc(key, in_dim, out_dim, gain):
    """normc init, torch layout [out, in], returned transposed to [in, out]."""
    w = jax.random.normal(key, (out_dim, in_dim), jnp.float32)
    w = w * gain / jnp.sqrt(jnp.sum(w * w, axis=1, keepdims=True))
    return w.T


def default_linear(key, in_dim, out_dim):
    """Approx. torch default Linear init (uniform +-1/sqrt(in))."""
    kw, kb = jax.random.split(key)
    bound = 1.0 / jnp.sqrt(jnp.float32(in_dim))
    w = jax.random.uniform(kw, (in_dim, out_dim), jnp.float32, -bound, bound)
    b = jax.random.uniform(kb, (1, out_dim), jnp.float32, -bound, bound)
    return w, b


def make_raw_params(key):
    gain = 5.0 / 3.0  # nn.init.calculate_gain('tanh')
    keys = jax.random.split(key, 16)

    # RunningMeanStd stats (deterministic, non-trivial)
    s_mean = jax.random.normal(keys[0], (1, DIM_STATE), jnp.float32) * 0.1
    s_var = jax.nn.softplus(jax.random.normal(keys[1], (1, DIM_STATE), jnp.float32)) + 0.5
    l_mean = jax.random.normal(keys[2], (1, DIM_LATENT), jnp.float32) * 0.1
    l_var = jax.nn.softplus(jax.random.normal(keys[3], (1, DIM_LATENT), jnp.float32)) + 0.5

    # FeatureExtractors (default Linear init)
    w_se, b_se = default_linear(keys[4], DIM_STATE, D_SE)
    w_le, b_le = default_linear(keys[5], DIM_LATENT, D_LE)

    # actor / critic hidden layers (normc init, zero bias)
    w_a1 = init_normc(keys[6], D_IN, H1, gain)
    w_c1 = init_normc(keys[7], D_IN, H1, gain)
    w_a2 = init_normc(keys[8], H1, H2, gain)
    w_c2 = init_normc(keys[9], H1, H2, gain)
    b_a1 = jnp.zeros((1, H1), jnp.float32)
    b_c1 = jnp.zeros((1, H1), jnp.float32)
    b_a2 = jnp.zeros((1, H2), jnp.float32)
    b_c2 = jnp.zeros((1, H2), jnp.float32)

    # critic_linear (default Linear init)
    w_cl, b_cl = default_linear(keys[10], H2, 1)

    return dict(
        s_mean=s_mean, s_var=s_var, l_mean=l_mean, l_var=l_var,
        w_se=w_se, b_se=b_se, w_le=w_le, b_le=b_le,
        w_a1=w_a1, b_a1=b_a1, w_a2=w_a2, b_a2=b_a2,
        w_c1=w_c1, b_c1=b_c1, w_c2=w_c2, b_c2=b_c2,
        w_cl=w_cl, b_cl=b_cl,
    )


# ----------- offline packing: one compact 144x128 f32 VMEM slab -------------
def pack_params(p):
    f32 = jnp.float32

    # fold RunningMeanStd into the encoder weights/biases
    inv_s = 1.0 / jnp.sqrt(p["s_var"] + 1e-8)                 # [1, dim_state]
    inv_l = 1.0 / jnp.sqrt(p["l_var"] + 1e-8)                 # [1, dim_latent]
    w_se_f = p["w_se"] * inv_s.T
    b_se_f = p["b_se"] - (p["s_mean"] * inv_s) @ p["w_se"]
    w_le_f = p["w_le"] * inv_l.T
    b_le_f = p["b_le"] - (p["l_mean"] * inv_l) @ p["w_le"]

    slab = jnp.zeros((N_ROWS, LANES), f32)

    # encoder weights: state rows -> lanes 0:32, latent rows -> lanes 32:48
    slab = slab.at[R_WSE:R_WSE + DIM_STATE, 0:D_SE].set(w_se_f)
    slab = slab.at[R_WLE:R_WLE + DIM_LATENT, D_SE:D_IN].set(w_le_f)

    # layer 1: column-concatenated actor | critic weights (K = 48 rows)
    slab = slab.at[R_W1:R_W1 + D_IN, 0:H1].set(p["w_a1"])
    slab = slab.at[R_W1:R_W1 + D_IN, H1:2 * H1].set(p["w_c1"])

    # layer 2: block-diagonal actor / critic weights (K = 64 rows)
    slab = slab.at[R_W2:R_W2 + H1, 0:H2].set(p["w_a2"])
    slab = slab.at[R_W2 + H1:R_W2 + 2 * H1, H2:2 * H2].set(p["w_c2"])

    # bias rows + value-head row + value bias row (one aligned 8x128 block)
    slab = slab.at[R_VECS + 0, 0:D_SE].set(b_se_f[0])
    slab = slab.at[R_VECS + 0, D_SE:D_IN].set(b_le_f[0])
    slab = slab.at[R_VECS + 1, 0:H1].set(p["b_a1"][0])
    slab = slab.at[R_VECS + 1, H1:2 * H1].set(p["b_c1"][0])
    slab = slab.at[R_VECS + 2, 0:H2].set(p["b_a2"][0])
    slab = slab.at[R_VECS + 2, H2:2 * H2].set(p["b_c2"][0])
    slab = slab.at[R_VECS + 3, H2:2 * H2].set(p["w_cl"][:, 0])
    slab = slab.at[R_VECS + 4, :].set(p["b_cl"][0, 0])

    assert slab.shape == (N_ROWS, LANES)
    return slab


# --------------------------- pure-JAX reference ------------------------------
def policy_forward_ref(state, latent, p):
    s = (state - p["s_mean"]) / jnp.sqrt(p["s_var"] + 1e-8)
    l = (latent - p["l_mean"]) / jnp.sqrt(p["l_var"] + 1e-8)
    se = jnp.tanh(s @ p["w_se"] + p["b_se"])
    le = jnp.tanh(l @ p["w_le"] + p["b_le"])
    inputs = jnp.concatenate([se, le], axis=-1)
    ha = jnp.tanh(inputs @ p["w_a1"] + p["b_a1"])
    ha = jnp.tanh(ha @ p["w_a2"] + p["b_a2"])
    hc = jnp.tanh(inputs @ p["w_c1"] + p["b_c1"])
    hc = jnp.tanh(hc @ p["w_c2"] + p["b_c2"])
    value = hc @ p["w_cl"] + p["b_cl"]
    return value, ha


# --------------------------------- main --------------------------------------
if __name__ == "__main__":
    key = jax.random.PRNGKey(0)
    k_params, k_state, k_latent = jax.random.split(key, 3)

    raw = make_raw_params(k_params)
    slab = jax.device_put(pack_params(raw))     # device-resident packed params
    state = jax.random.normal(k_state, (B, DIM_STATE), jnp.float32)
    latent = jax.random.normal(k_latent, (B, DIM_LATENT), jnp.float32)

    value, hidden_actor = policy_forward(state, latent, slab)
    jax.block_until_ready((value, hidden_actor))

    value_ref, actor_ref = policy_forward_ref(state, latent, raw)
    assert value.shape == (B, 1) and hidden_actor.shape == (B, H2)
    # folded RMS stats + reassociated compact-K matmuls => tiny fp drift
    assert jnp.allclose(value, value_ref, atol=1e-4, rtol=1e-4)
    assert jnp.allclose(hidden_actor, actor_ref, atol=1e-4, rtol=1e-4)

    # TODO(synk): the Categorical / DiagGaussian distribution heads (and the
    # sampling in act/evaluate_actions) are stochastic-object APIs with no
    # Pallas equivalent; Policy.forward() itself (implemented above) does not
    # invoke them.
    print("KERNEL_OK")
</pallas_src>

<mosaic_0001>
module attributes {stable_mosaic.version = 11 : i64} {
  func.func @policy_forward_kernel(%arg0: i32, %arg1: memref<8x16xf32, #tpu.memory_space<vmem>>, %arg2: memref<8x8xf32, #tpu.memory_space<vmem>>, %arg3: memref<144x128xf32, #tpu.memory_space<vmem>>, %arg4: memref<8x128xf32, #tpu.memory_space<vmem>>) attributes {dimension_semantics = [#tpu.dimension_semantics<parallel>], iteration_bounds = array<i64: 1>, scalar_prefetch = 0 : i64, scratch_operands = 0 : i64, tpu.core_type = #tpu.core_type<tc>, window_params = [{transform_indices = @transform_0, window_bounds = array<i64: 8, 16>}, {transform_indices = @transform_1, window_bounds = array<i64: 8, 8>}, {pipeline_mode = #tpu.pipeline_mode<synchronous>, transform_indices = @transform_2, window_bounds = array<i64: 144, 128>}, {transform_indices = @transform_3, window_bounds = array<i64: 8, 128>}]} {
    %c0 = arith.constant 0 : index
    %c0_0 = arith.constant 0 : index
    %0 = vector.load %arg1[%c0, %c0_0] : memref<8x16xf32, #tpu.memory_space<vmem>>, vector<8x16xf32>
    %c0_1 = arith.constant 0 : index
    %c0_2 = arith.constant 0 : index
    %1 = vector.load %arg2[%c0_1, %c0_2] : memref<8x8xf32, #tpu.memory_space<vmem>>, vector<8x8xf32>
    %c136 = arith.constant 136 : index
    %c0_3 = arith.constant 0 : index
    %2 = vector.load %arg3[%c136, %c0_3] : memref<144x128xf32, #tpu.memory_space<vmem>>, vector<8x128xf32>
    %3 = vector.extract_strided_slice %2 {offsets = [0, 0], sizes = [1, 128], strides = [1, 1]} : vector<8x128xf32> to vector<1x128xf32>
    %4 = vector.extract_strided_slice %2 {offsets = [1, 0], sizes = [1, 128], strides = [1, 1]} : vector<8x128xf32> to vector<1x128xf32>
    %5 = vector.extract_strided_slice %2 {offsets = [2, 0], sizes = [1, 128], strides = [1, 1]} : vector<8x128xf32> to vector<1x128xf32>
    %6 = vector.extract_strided_slice %2 {offsets = [3, 0], sizes = [1, 128], strides = [1, 1]} : vector<8x128xf32> to vector<1x128xf32>
    %7 = vector.extract_strided_slice %2 {offsets = [4, 0], sizes = [1, 128], strides = [1, 1]} : vector<8x128xf32> to vector<1x128xf32>
    %c0_4 = arith.constant 0 : index
    %c0_5 = arith.constant 0 : index
    %8 = vector.load %arg3[%c0_4, %c0_5] : memref<144x128xf32, #tpu.memory_space<vmem>>, vector<16x128xf32>
    %cst = arith.constant dense<0.000000e+00> : vector<8x128xf32>
    %9 = tpu.matmul %0, %8, %cst {dimension_numbers = #tpu.dot_dimension_numbers<[1], [0], [0], [1], [0, 0, 1, 1], [], []>} : vector<8x16xf32>, vector<16x128xf32>, vector<8x128xf32> -> vector<8x128xf32>
    %c16 = arith.constant 16 : index
    %c0_6 = arith.constant 0 : index
    %10 = vector.load %arg3[%c16, %c0_6] : memref<144x128xf32, #tpu.memory_space<vmem>>, vector<8x128xf32>
    %cst_7 = arith.constant dense<0.000000e+00> : vector<8x128xf32>
    %11 = tpu.matmul %1, %10, %cst_7 {dimension_numbers = #tpu.dot_dimension_numbers<[1], [0], [0], [1], [0, 0, 1, 1], [], []>} : vector<8x8xf32>, vector<8x128xf32>, vector<8x128xf32> -> vector<8x128xf32>
    %12 = arith.addf %9, %11 : vector<8x128xf32>
    %13 = vector.broadcast %3 : vector<1x128xf32> to vector<8x128xf32>
    %14 = arith.addf %12, %13 : vector<8x128xf32>
    %15 = math.tanh %14 : vector<8x128xf32>
    %16 = vector.extract_strided_slice %15 {offsets = [0, 0], sizes = [8, 48], strides = [1, 1]} : vector<8x128xf32> to vector<8x48xf32>
    %c24 = arith.constant 24 : index
    %c0_8 = arith.constant 0 : index
    %17 = vector.load %arg3[%c24, %c0_8] : memref<144x128xf32, #tpu.memory_space<vmem>>, vector<48x128xf32>
    %cst_9 = arith.constant dense<0.000000e+00> : vector<8x128xf32>
    %18 = tpu.matmul %16, %17, %cst_9 {dimension_numbers = #tpu.dot_dimension_numbers<[1], [0], [0], [1], [0, 0, 1, 1], [], []>} : vector<8x48xf32>, vector<48x128xf32>, vector<8x128xf32> -> vector<8x128xf32>
    %19 = vector.broadcast %4 : vector<1x128xf32> to vector<8x128xf32>
    %20 = arith.addf %18, %19 : vector<8x128xf32>
    %21 = math.tanh %20 : vector<8x128xf32>
    %22 = vector.extract_strided_slice %21 {offsets = [0, 0], sizes = [8, 64], strides = [1, 1]} : vector<8x128xf32> to vector<8x64xf32>
    %c72 = arith.constant 72 : index
    %c0_10 = arith.constant 0 : index
    %23 = vector.load %arg3[%c72, %c0_10] : memref<144x128xf32, #tpu.memory_space<vmem>>, vector<64x128xf32>
    %cst_11 = arith.constant dense<0.000000e+00> : vector<8x128xf32>
    %24 = tpu.matmul %22, %23, %cst_11 {dimension_numbers = #tpu.dot_dimension_numbers<[1], [0], [0], [1], [0, 0, 1, 1], [], []>} : vector<8x64xf32>, vector<64x128xf32>, vector<8x128xf32> -> vector<8x128xf32>
    %25 = vector.broadcast %5 : vector<1x128xf32> to vector<8x128xf32>
    %26 = arith.addf %24, %25 : vector<8x128xf32>
    %27 = math.tanh %26 : vector<8x128xf32>
    %28 = vector.broadcast %6 : vector<1x128xf32> to vector<8x128xf32>
    %29 = arith.mulf %27, %28 : vector<8x128xf32>
    %cst_12 = arith.constant dense<0.000000e+00> : vector<8xf32>
    %30 = vector.multi_reduction <add>, %29, %cst_12 [1] : vector<8x128xf32> to vector<8xf32>
    %31 = vector.shape_cast %30 : vector<8xf32> to vector<8x1xf32>
    %32 = tpu.iota {dimensions = array<i32: 1>} : vector<8x128xi32>
    %c64_i32 = arith.constant 64 : i32
    %33 = vector.broadcast %c64_i32 : i32 to vector<8x128xi32>
    %34 = arith.cmpi slt, %32, %33 : vector<8x128xi32>
    %35 = vector.broadcast %31 : vector<8x1xf32> to vector<8x128xf32>
    %36 = vector.broadcast %7 : vector<1x128xf32> to vector<8x128xf32>
    %37 = arith.addf %35, %36 : vector<8x128xf32>
    %38 = arith.select %34, %27, %37 : vector<8x128xi1>, vector<8x128xf32>
    %c0_13 = arith.constant 0 : index
    %c0_14 = arith.constant 0 : index
    %39 = vector.load %arg4[%c0_13, %c0_14] : memref<8x128xf32, #tpu.memory_space<vmem>>, vector<8x128xf32>
    tpu.vector_store %arg4[%c0_13, %c0_14], %38 {strides = array<i32>} : memref<8x128xf32, #tpu.memory_space<vmem>>, vector<8x128xf32>,
    return
  }
  func.func @transform_0(%arg0: i32) -> (i32, i32) {
    %c0_i32 = arith.constant 0 : i32
    %c0_i32_0 = arith.constant 0 : i32
    return %arg0, %c0_i32 : i32, i32
  }
  func.func @transform_1(%arg0: i32) -> (i32, i32) {
    %c0_i32 = arith.constant 0 : i32
    %c0_i32_0 = arith.constant 0 : i32
    return %arg0, %c0_i32 : i32, i32
  }
  func.func @transform_2(%arg0: i32) -> (i32, i32) {
    %c0_i32 = arith.constant 0 : i32
    %c0_i32_0 = arith.constant 0 : i32
    %c0_i32_1 = arith.constant 0 : i32
    return %c0_i32, %c0_i32_0 : i32, i32
  }
  func.func @transform_3(%arg0: i32) -> (i32, i32) {
    %c0_i32 = arith.constant 0 : i32
    %c0_i32_0 = arith.constant 0 : i32
    return %arg0, %c0_i32 : i32, i32
  }
}

</mosaic_0001>

<bundles_post_ra>
// kernel: _policy_forward.1
= control target key start
LH: loop header
LB: loop body
LE: loop exit
PB: predicated region body
PF: predicated region fallthrough
CT: control target
= control target key end

     0   :  { %8 = vsyncpa [#allocation3], 0  ;;  %s325_s0 = inlined_call_operand.hbm [shape: f32[8,16], index: 0, kind: input, shape index: {}]   ;;  %s326_s1 = inlined_call_operand.hbm [shape: f32[8,8], index: 1, kind: input, shape index: {}]   ;;  %s327_s2 = inlined_call_operand.hbm [shape: f32[144,128], index: 2, kind: input, shape index: {}]   ;;  %s328_s3 = inlined_call_operand.vmem [shape: f32[8,128], index: 3, kind: output, shape index: {}]  }
   0x1   :  { %9 = vsyncpa [#allocation5], 0  ;;  %s26_s14 = sshll.u32 %s326_s1, 4  ;;  %s288_s15 = smov [#allocation4]   ;;  %s27_s14 = int_to_ptr.hbm [resolvable:$true] %s26_s14 }
   0x2   :  { %s28_s16 = sshll.u32 %s288_s15, 4  ;;  %s15_s19 = sshll.u32 %s325_s0, 4  ;;  %s29_s16 = int_to_ptr.vmem [resolvable:$true] %s28_s16  ;;  %s16_s19 = int_to_ptr.hbm [resolvable:$true] %s15_s19 }
   0x3   :  { %31 = dma.hbm_to_vmem [thread:$0]  %s27_s14, 128, %s29_s16, [#allocation5]  }
   0x4   :  { %s289_s20 = smov [#allocation2]   ;;  %s36_s24 = sshll.u32 %s327_s2, 4  ;;  %s37_s24 = int_to_ptr.hbm [resolvable:$true] %s36_s24 }
   0x5   :  { %s17_s21 = sshll.u32 %s289_s20, 4  ;;  %s290_s1 = smov [#allocation6]   ;;  %s18_s21 = int_to_ptr.vmem [resolvable:$true] %s17_s21 }
   0x6   :  { %20 = dma.hbm_to_vmem [thread:$0]  %s16_s19, 128, %s18_s21, [#allocation3]  }
   0x7   :  { %s38_s25 = sshll.u32 %s290_s1, 4  ;;  %s291_s26 = smov 128   ;;  %s39_s25 = int_to_ptr.vmem [resolvable:$true] %s38_s25 }
   0x8   :  { %s292_s27 = smov 8  }
   0x9   :  { %44 = dma.hbm_to_vmem [thread:$0]  %s37_s24, 2304, %s39_s25, [#allocation5], %s291_s26, %s291_s26, %s292_s27  }
   0xa   :  { %284 = dma.done.wait [#allocation3], 128  }
   0xb   :  { %285 = vsyncadd [#allocation3], 4294967168 }
   0xc   :  { %286 = dma.done.wait [#allocation5], 2432  }
   0xd   :  { %287 = vsyncadd [#allocation5], 4294964864  ;;  %vm63_vm0 = vcmask 64512   ;;  %v61_v0 = vld [vmem:[#allocation6 + $0x8] sm:$0xff]  ;;  %v62_v1 = vld [vmem:[#allocation6 + $0x10] sm:$0xff]  ;;  %vm87_vm1 = vcmask 130048   ;;  %v184_v36 = vlaneseq }
   0xe   :  { %v60_v2 = vld [vmem:[#allocation6] sm:$0xff]  ;;  %105 = vmatpush.msra.mxu1 %v61_v0  ;;  %82 = vmatpush.msra.mxu0 %v62_v1  ;;  %v58_v3 = vld [vmem:[#allocation4] sm:$0xff]  ;;  %v57_v4 = vld [vmem:[#allocation2] sm:$0xff]  ;;  %vm121_vm2 = vcmask 392192   ;;  %vm155_vm3 = vcmask 523264  }
   0xf   :  { %197 = vmatmul.msk.f32.vlgmr.msra.gmra.mxu0 %vm63_vm0, %v58_v3  ;;  %v119_v5 = vld [vmem:[#allocation6 + $0x40] sm:$0xff]  ;;  %v118_v6 = vld [vmem:[#allocation6 + $0x38] sm:$0xff]  ;;  %v117_v7 = vld [vmem:[#allocation6 + $0x30] sm:$0xff]  ;;  %v185_v37 = vand.u32 127, %v184_v36 }
  0x10   :  { %106 = vmatpush.msra.mxu1 %v60_v2  ;;  %135 = vmatpush.msra.mxu2 %v119_v5  ;;  %v116_v8 = vld [vmem:[#allocation6 + $0x28] sm:$0xff]  ;;  %v115_v9 = vld [vmem:[#allocation6 + $0x20] sm:$0xff]  ;;  %v114_v10 = vld [vmem:[#allocation6 + $0x18] sm:$0xff] }
  0x11   :  { %198 = vmatmul.msk.f32.vlgmr.msra.gmra.mxu1 %vm87_vm1, %v57_v4  ;;  %v153_v11 = vld [vmem:[#allocation6 + $0x80] sm:$0xff]  ;;  %v152_v12 = vld [vmem:[#allocation6 + $0x78] sm:$0xff]  ;;  %v151_v13 = vld [vmem:[#allocation6 + $0x70] sm:$0xff]  ;;  %vm186_vm4 = vcmp.lt.s32.totalorder %v185_v37, 64 }
  0x12   :  { %136 = vmatpush.msra.mxu2 %v118_v6  ;;  %167 = vmatpush.msra.mxu3 %v153_v11  ;;  %v59_v14 = vld [vmem:[#allocation6 + $0x88] sm:$0xff]  ;;  %v149_v22 = vld [vmem:[#allocation6 + $0x60] sm:$0xff]  ;;  %v148_v23 = vld [vmem:[#allocation6 + $0x58] sm:$0xff] }
  0x13   :  { %v111_v16 = vperm.slane %v59_v14, 0  ;;  %v150_v21 = vld [vmem:[#allocation6 + $0x68] sm:$0xff]  ;;  %v147_v24 = vld [vmem:[#allocation6 + $0x50] sm:$0xff]  ;;  %v120_v26 = vperm.slane %v59_v14, 1  ;;  %v154_v30 = vperm.slane %v59_v14, 2  ;;  %v180_v33 = vperm.slane %v59_v14, 3 }
  0x14   :  { %137 = vmatpush.msra.mxu2 %v117_v7  ;;  %168 = vmatpush.msra.mxu3 %v152_v12  ;;  %v146_v25 = vld [vmem:[#allocation6 + $0x48] sm:$0xff]  ;;  %v187_v38 = vperm.slane %v59_v14, 4 }
  0x16   :  { %138 = vmatpush.msra.mxu2 %v116_v8  ;;  %169 = vmatpush.msra.mxu3 %v151_v13 }
  0x18   :  { %139 = vmatpush.msra.mxu2 %v115_v9  ;;  %170 = vmatpush.msra.mxu3 %v150_v21 }
  0x1a   :  { %140 = vmatpush.msra.mxu2 %v114_v10  ;;  %171 = vmatpush.msra.mxu3 %v149_v22 }
  0x1c   :  { %172 = vmatpush.msra.mxu3 %v148_v23 }
  0x1e   :  { %173 = vmatpush.msra.mxu3 %v147_v24 }
  0x20   :  { %174 = vmatpush.msra.mxu3 %v146_v25 }
  0x8c   :  { %v84_v15 = vpop.f32.mrf.mxu0 }
  0x8e   :  { %v108_v17 = vpop.f32.mrf.mxu1 }
  0x8f   :  { %v109_v18 = vadd.f32 %v108_v17, %v84_v15 }
  0x91   :  { %v112_v19 = vadd.f32 %v111_v16, %v109_v18 }
  0x93   :  { %206 = vtanh.f32 %v112_v19 }
  0x99   :  { %v207_v20 = vpop.eup %206 }
  0x9a   :  { %199 = vmatmul.msk.f32.vlgmr.msra.gmra.mxu2 %vm121_vm2, %v207_v20 }
 0x11d   :  { %v142_v27 = vpop.f32.mrf.mxu2 }
 0x11e   :  { %v143_v28 = vadd.f32 %v142_v27, %v120_v26 }
 0x120   :  { %208 = vtanh.f32 %v143_v28 }
 0x126   :  { %v209_v29 = vpop.eup %208 }
 0x127   :  { %200 = vmatmul.msk.f32.vlgmr.msra.gmra.mxu3 %vm155_vm3, %v209_v29 }
 0x1aa   :  { %v176_v31 = vpop.f32.mrf.mxu3 }
 0x1ab   :  { %v177_v32 = vadd.f32 %v176_v31, %v154_v30 }
 0x1ad   :  { %210 = vtanh.f32 %v177_v32 }
 0x1b3   :  { %v211_v34 = vpop.eup %210 }
 0x1b4   :  { %v181_v35 = vmul.f32 %v211_v34, %v180_v33 }
 0x1b6   :  { %182 = vadd.xlane.f32.xlu0 %v181_v35 }
 0x229   :  { %v183_v39 = vpop.xlane.xlu0 %182 }
 0x22a   :  { %v188_v40 = vadd.f32 %v187_v38, %v183_v39 }
 0x22c   :  { %v189_v41 = vsel %vm186_vm4, %v211_v34, %v188_v40 }
 0x22d   :  { %190 = vst [vmem:[%s328_s3] sm:$0xff] %v189_v41 }
 0x22e   :  { %195 = vsyncpa [#allocation3], 1 }
 0x22f   :  { %196 = vsyncpa [#allocation5], 1 }

</bundles_post_ra>
